<compile_context>
chip_gen: v5e
topology: v5e:2x2
jax: 0.10.0
libtpu: 0.0.40
codegen_flags: <defaults>
</compile_context>

<pallas_src>
import jax
import jax.numpy as jnp
from jax import lax
from jax.experimental import pallas as pl
from jax.experimental.pallas import tpu as pltpu

LRELU_SLOPE = 0.01          # torch default negative_slope for nn.LeakyReLU
BN_EPS = 1e-5
CONV_DTYPE = jnp.bfloat16   # MXU input dtype for the conv matmuls (f32 accumulation)


def _round_up(n, m):
    return ((n + m - 1) // m) * m


def _pick_tile(n, unit, max_tile):
    """Return (n_pad, tile): n_pad is a multiple of tile, tile a multiple of unit."""
    if n <= max_tile:
        n_pad = _round_up(n, unit)
        return n_pad, n_pad
    n_pad = _round_up(n, max_tile)
    return n_pad, max_tile


# ----------------------------- Pallas kernels ------------------------------

def _conv_bn_lrelu_pool_kernel(p_ref, w_ref, shift_ref, o_ref):
    """Fused conv(as matmul) + BN affine + 2x2 maxpool + LeakyReLU.

    p_ref:     (4, K, TM)  4 pool-window taps of the im2col patches; K on
                           sublanes, TM pooled pixels on lanes (bf16).
    w_ref:     (Cout, K)   BN-scale-folded conv weights (bf16).
    shift_ref: (Cout, 1)   BN shift = (bias - mean) * scale + beta (f32).
    o_ref:     (Cout, TM)  pooled + activated output (f32, lane-dense).
    """
    w = w_ref[...]
    acc = jnp.dot(w, p_ref[0], preferred_element_type=jnp.float32)
    for t in range(1, 4):  # max over the 2x2 pool-window taps (exact: lrelu is monotone)
        acc = jnp.maximum(acc, jnp.dot(w, p_ref[t], preferred_element_type=jnp.float32))
    y = acc + shift_ref[...]
    o_ref[...] = jnp.where(y >= 0.0, y, LRELU_SLOPE * y).astype(o_ref.dtype)


def _mlp_kernel(x_ref, w1_ref, b1_ref, w2_ref, b2_ref, w3_ref, b3_ref, o_ref):
    """Fused fc1 + LeakyReLU + fc2 + fc3; intermediates never leave VMEM."""
    h = jnp.dot(x_ref[...], w1_ref[...], preferred_element_type=jnp.float32) + b1_ref[...]
    h = jnp.where(h >= 0.0, h, LRELU_SLOPE * h)
    h = jnp.dot(h, w2_ref[...], preferred_element_type=jnp.float32) + b2_ref[...]
    o = jnp.dot(h, w3_ref[...], preferred_element_type=jnp.float32) + b3_ref[...]
    o_ref[...] = o.astype(o_ref.dtype)


# ------------------------------- JAX glue ----------------------------------

def _pooled_im2col_T(x_nhwc, k):
    """Patches laid out (4 pool taps, K=(di,dj,ci), M=(b,ph,pw)) for the fused kernel."""
    B, H, W, C = x_nhwc.shape
    OH, OW = H - k + 1, W - k + 1
    PH, PW = OH // 2, OW // 2
    taps = []
    for ti in range(2):
        for tj in range(2):
            cols = []
            for di in range(k):
                for dj in range(k):
                    cols.append(x_nhwc[:, ti + di: ti + di + 2 * PH: 2,
                                       tj + dj: tj + dj + 2 * PW: 2, :])  # (B,PH,PW,C)
            taps.append(jnp.stack(cols, axis=0))          # (k*k, B, PH, PW, C)
    p = jnp.stack(taps, axis=0)                           # (4, k*k, B, PH, PW, C)
    p = jnp.transpose(p, (0, 1, 5, 2, 3, 4))              # (4, k*k, C, B, PH, PW)
    return p.reshape(4, k * k * C, B * PH * PW), (B, PH, PW)


def conv_bn_lrelu_pool(x_nhwc, w_oihw, bias, gamma, beta, mean, var):
    """Conv2d(k=5,s=1,p=0) + BatchNorm2d(eval) + LeakyReLU + MaxPool2d(2,2): one pallas_call."""
    cout, cin, k, _ = w_oihw.shape
    p, (B, PH, PW) = _pooled_im2col_T(x_nhwc, k)
    K = k * k * cin
    Mp = B * PH * PW

    # Fold BN scale into the weights: y = conv(x, w*scale) + shift
    scale = gamma / jnp.sqrt(var + BN_EPS)
    shift = ((bias - mean) * scale + beta).reshape(cout, 1).astype(jnp.float32)
    w_mat = jnp.transpose(w_oihw, (0, 2, 3, 1)).reshape(cout, K) * scale[:, None]

    # Pad K to a sublane multiple and M (pooled pixels) to the lane tile.
    K_pad = _round_up(K, 8)
    Mp_pad, TM = _pick_tile(Mp, 128, 512)
    p = jnp.pad(p, ((0, 0), (0, K_pad - K), (0, Mp_pad - Mp))).astype(CONV_DTYPE)
    w_mat = jnp.pad(w_mat, ((0, 0), (0, K_pad - K))).astype(CONV_DTYPE)

    out = pl.pallas_call(
        _conv_bn_lrelu_pool_kernel,
        out_shape=jax.ShapeDtypeStruct((cout, Mp_pad), jnp.float32),
        grid_spec=pltpu.PrefetchScalarGridSpec(
            num_scalar_prefetch=0,
            grid=(Mp_pad // TM,),
            in_specs=[
                pl.BlockSpec((4, K_pad, TM), lambda i: (0, 0, i)),
                pl.BlockSpec((cout, K_pad), lambda i: (0, 0)),
                pl.BlockSpec((cout, 1), lambda i: (0, 0)),
            ],
            out_specs=pl.BlockSpec((cout, TM), lambda i: (0, i)),
        ),
        compiler_params=pltpu.CompilerParams(dimension_semantics=("parallel",)),
    )(p, w_mat, shift)

    out = out[:, :Mp].reshape(cout, B, PH, PW)
    return jnp.transpose(out, (1, 2, 3, 0))               # NHWC


def mlp_head(x, p):
    """fc1 + LeakyReLU + fc2 + fc3 in one pallas_call (torch Linear semantics)."""
    B, F = x.shape
    B_pad, TB = _pick_tile(B, 8, 256)
    if B_pad != B:
        x = jnp.pad(x, ((0, B_pad - B), (0, 0)))
    w1 = jnp.transpose(p["fc1_w"])          # (256, 128)
    w2 = jnp.transpose(p["fc2_w"])          # (128, 64)
    w3 = jnp.transpose(p["fc3_w"])          # (64, 10)
    b1 = p["fc1_b"].reshape(1, -1)
    b2 = p["fc2_b"].reshape(1, -1)
    b3 = p["fc3_b"].reshape(1, -1)
    n1, n2, n3 = w1.shape[1], w2.shape[1], w3.shape[1]

    out = pl.pallas_call(
        _mlp_kernel,
        out_shape=jax.ShapeDtypeStruct((B_pad, n3), jnp.float32),
        grid_spec=pltpu.PrefetchScalarGridSpec(
            num_scalar_prefetch=0,
            grid=(B_pad // TB,),
            in_specs=[
                pl.BlockSpec((TB, F), lambda i: (i, 0)),
                pl.BlockSpec((F, n1), lambda i: (0, 0)),
                pl.BlockSpec((1, n1), lambda i: (0, 0)),
                pl.BlockSpec((n1, n2), lambda i: (0, 0)),
                pl.BlockSpec((1, n2), lambda i: (0, 0)),
                pl.BlockSpec((n2, n3), lambda i: (0, 0)),
                pl.BlockSpec((1, n3), lambda i: (0, 0)),
            ],
            out_specs=pl.BlockSpec((TB, n3), lambda i: (i, 0)),
        ),
        compiler_params=pltpu.CompilerParams(dimension_semantics=("parallel",)),
    )(x, w1, b1, w2, b2, w3, b3)
    return out[:B]


# --------------------------- parameter creation -----------------------------

def init_params(key):
    ks = jax.random.split(key, 16)
    p = {}
    p["w1"] = 0.1 * jax.random.normal(ks[0], (6, 1, 5, 5), jnp.float32)
    p["b1"] = 0.1 * jax.random.normal(ks[1], (6,), jnp.float32)
    p["g1"] = 1.0 + 0.1 * jax.random.normal(ks[2], (6,), jnp.float32)
    p["be1"] = 0.1 * jax.random.normal(ks[3], (6,), jnp.float32)
    p["m1"] = 0.05 * jax.random.normal(ks[4], (6,), jnp.float32)
    p["v1"] = 0.5 + jax.random.uniform(ks[5], (6,), jnp.float32)

    p["w2"] = 0.1 * jax.random.normal(ks[6], (16, 6, 5, 5), jnp.float32)
    p["b2"] = 0.1 * jax.random.normal(ks[7], (16,), jnp.float32)
    p["g2"] = 1.0 + 0.1 * jax.random.normal(ks[8], (16,), jnp.float32)
    p["be2"] = 0.1 * jax.random.normal(ks[9], (16,), jnp.float32)
    p["m2"] = 0.05 * jax.random.normal(ks[10], (16,), jnp.float32)
    p["v2"] = 0.5 + jax.random.uniform(ks[11], (16,), jnp.float32)

    p["fc1_w"] = 0.05 * jax.random.normal(ks[12], (128, 256), jnp.float32)
    p["fc1_b"] = 0.05 * jax.random.normal(ks[13], (128,), jnp.float32)
    p["fc2_w"] = 0.05 * jax.random.normal(ks[14], (64, 128), jnp.float32)
    p["fc2_b"] = jnp.zeros((64,), jnp.float32)
    p["fc3_w"] = 0.05 * jax.random.normal(ks[15], (10, 64), jnp.float32)
    p["fc3_b"] = jnp.zeros((10,), jnp.float32)
    return p


# ------------------------------ forward pass --------------------------------

def lenet_forward(x, p):
    # X.view(-1, 1, 28, 28); input arrives NCHW -> convert to NHWC.
    x = x.reshape(-1, 1, 28, 28).astype(jnp.float32)
    x = jnp.transpose(x, (0, 2, 3, 1))  # NHWC

    # layer1: Conv(1->6,k5)+BN+LeakyReLU+MaxPool2x2  (28 -> 24 -> 12), one kernel
    x = conv_bn_lrelu_pool(x, p["w1"], p["b1"], p["g1"], p["be1"], p["m1"], p["v1"])
    # layer2: Conv(6->16,k5)+BN+LeakyReLU+MaxPool2x2 (12 -> 8 -> 4), one kernel
    x = conv_bn_lrelu_pool(x, p["w2"], p["b2"], p["g2"], p["be2"], p["m2"], p["v2"])

    # flatten in torch NCHW order: (B, C, H, W) -> (B, C*H*W)
    B = x.shape[0]
    x = jnp.transpose(x, (0, 3, 1, 2)).reshape(B, 16 * 4 * 4)

    # linear_relu_stack, fused into one kernel
    return mlp_head(x, p)


# ------------------------- pure-JAX reference (check) ------------------------

def lenet_reference(x, p, *, match_kernel_rounding=False):
    """Pure-JAX reference.  match_kernel_rounding=True rounds the conv MXU operands
    to bf16 at exactly the points the Pallas pipeline does (tight check);
    False keeps full f32 module semantics (loose check on bf16 quantization)."""
    hi = lax.Precision.HIGHEST

    def q(v):
        return v.astype(CONV_DTYPE).astype(jnp.float32) if match_kernel_rounding else v

    def lrelu(v):
        return jnp.where(v >= 0, v, LRELU_SLOPE * v)

    def conv_block(v, w, b, g, be, m, var):
        scale = g / jnp.sqrt(var + BN_EPS)
        shift = (b - m) * scale + be
        w_hwio = jnp.transpose(w, (2, 3, 1, 0)) * scale     # fold BN scale into weights
        y = lax.conv_general_dilated(q(v), q(w_hwio), (1, 1), "VALID",
                                     dimension_numbers=("NHWC", "HWIO", "NHWC"),
                                     precision=hi)
        y = lrelu(y + shift)
        return lax.reduce_window(y, -jnp.inf, lax.max, (1, 2, 2, 1), (1, 2, 2, 1), "VALID")

    v = x.reshape(-1, 1, 28, 28).astype(jnp.float32)
    v = jnp.transpose(v, (0, 2, 3, 1))
    v = conv_block(v, p["w1"], p["b1"], p["g1"], p["be1"], p["m1"], p["v1"])
    v = conv_block(v, p["w2"], p["b2"], p["g2"], p["be2"], p["m2"], p["v2"])
    B = v.shape[0]
    v = jnp.transpose(v, (0, 3, 1, 2)).reshape(B, 256)
    v = lrelu(jnp.dot(v, p["fc1_w"].T, precision=hi) + p["fc1_b"])
    v = jnp.dot(v, p["fc2_w"].T, precision=hi) + p["fc2_b"]
    v = jnp.dot(v, p["fc3_w"].T, precision=hi) + p["fc3_b"]
    return v


# ---------------------------------- main ------------------------------------

if __name__ == "__main__":
    key = jax.random.PRNGKey(0)
    k_x, k_p = jax.random.split(key)
    x = jax.random.normal(k_x, (2, 1, 28, 28), jnp.float32)  # batch=2, MNIST-sized
    params = init_params(k_p)

    fwd = jax.jit(lenet_forward)
    out = jax.block_until_ready(fwd(x, params))
    assert out.shape == (2, 10), out.shape

    # Tight check: reference with the same bf16 rounding of the conv MXU operands.
    ref_matched = jax.block_until_ready(
        lenet_reference(x, params, match_kernel_rounding=True))
    assert jnp.allclose(out, ref_matched, atol=5e-3, rtol=5e-3), (
        f"mismatch vs bf16-matched reference: {jnp.max(jnp.abs(out - ref_matched))}")

    # Loose check: full-f32 module semantics (bounds the bf16 quantization error).
    ref_f32 = jax.block_until_ready(
        lenet_reference(x, params, match_kernel_rounding=False))
    assert jnp.allclose(out, ref_f32, atol=3e-2, rtol=3e-2), (
        f"mismatch vs f32 reference: {jnp.max(jnp.abs(out - ref_f32))}")

    print("KERNEL_OK")
</pallas_src>

<mosaic_0001>
module attributes {stable_mosaic.version = 11 : i64} {
  func.func @_conv_bn_lrelu_pool_kernel(%arg0: i32, %arg1: memref<4x32x384xbf16, #tpu.memory_space<vmem>>, %arg2: memref<6x32xbf16, #tpu.memory_space<vmem>>, %arg3: memref<6x1xf32, #tpu.memory_space<vmem>>, %arg4: memref<6x384xf32, #tpu.memory_space<vmem>>) attributes {dimension_semantics = [#tpu.dimension_semantics<parallel>], iteration_bounds = array<i64: 1>, scalar_prefetch = 0 : i64, scratch_operands = 0 : i64, tpu.core_type = #tpu.core_type<tc>, window_params = [{transform_indices = @transform_0, window_bounds = array<i64: 4, 32, 384>}, {pipeline_mode = #tpu.pipeline_mode<synchronous>, transform_indices = @transform_1, window_bounds = array<i64: 6, 32>}, {pipeline_mode = #tpu.pipeline_mode<synchronous>, transform_indices = @transform_2, window_bounds = array<i64: 6, 1>}, {transform_indices = @transform_3, window_bounds = array<i64: 6, 384>}]} {
    %c0 = arith.constant 0 : index
    %c0_0 = arith.constant 0 : index
    %0 = vector.load %arg2[%c0, %c0_0] : memref<6x32xbf16, #tpu.memory_space<vmem>>, vector<6x32xbf16>
    %c0_1 = arith.constant 0 : index
    %c0_2 = arith.constant 0 : index
    %c0_3 = arith.constant 0 : index
    %1 = vector.load %arg1[%c0_1, %c0_2, %c0_3] : memref<4x32x384xbf16, #tpu.memory_space<vmem>>, vector<1x32x384xbf16>
    %2 = vector.shape_cast %1 : vector<1x32x384xbf16> to vector<32x384xbf16>
    %cst = arith.constant dense<0.000000e+00> : vector<6x384xf32>
    %3 = tpu.matmul %0, %2, %cst {dimension_numbers = #tpu.dot_dimension_numbers<[1], [0], [0], [1], [0, 0, 1, 1], [], []>} : vector<6x32xbf16>, vector<32x384xbf16>, vector<6x384xf32> -> vector<6x384xf32>
    %c1 = arith.constant 1 : index
    %c0_4 = arith.constant 0 : index
    %c0_5 = arith.constant 0 : index
    %4 = vector.load %arg1[%c1, %c0_4, %c0_5] : memref<4x32x384xbf16, #tpu.memory_space<vmem>>, vector<1x32x384xbf16>
    %5 = vector.shape_cast %4 : vector<1x32x384xbf16> to vector<32x384xbf16>
    %cst_6 = arith.constant dense<0.000000e+00> : vector<6x384xf32>
    %6 = tpu.matmul %0, %5, %cst_6 {dimension_numbers = #tpu.dot_dimension_numbers<[1], [0], [0], [1], [0, 0, 1, 1], [], []>} : vector<6x32xbf16>, vector<32x384xbf16>, vector<6x384xf32> -> vector<6x384xf32>
    %7 = arith.maximumf %3, %6 : vector<6x384xf32>
    %c2 = arith.constant 2 : index
    %c0_7 = arith.constant 0 : index
    %c0_8 = arith.constant 0 : index
    %8 = vector.load %arg1[%c2, %c0_7, %c0_8] : memref<4x32x384xbf16, #tpu.memory_space<vmem>>, vector<1x32x384xbf16>
    %9 = vector.shape_cast %8 : vector<1x32x384xbf16> to vector<32x384xbf16>
    %cst_9 = arith.constant dense<0.000000e+00> : vector<6x384xf32>
    %10 = tpu.matmul %0, %9, %cst_9 {dimension_numbers = #tpu.dot_dimension_numbers<[1], [0], [0], [1], [0, 0, 1, 1], [], []>} : vector<6x32xbf16>, vector<32x384xbf16>, vector<6x384xf32> -> vector<6x384xf32>
    %11 = arith.maximumf %7, %10 : vector<6x384xf32>
    %c3 = arith.constant 3 : index
    %c0_10 = arith.constant 0 : index
    %c0_11 = arith.constant 0 : index
    %12 = vector.load %arg1[%c3, %c0_10, %c0_11] : memref<4x32x384xbf16, #tpu.memory_space<vmem>>, vector<1x32x384xbf16>
    %13 = vector.shape_cast %12 : vector<1x32x384xbf16> to vector<32x384xbf16>
    %cst_12 = arith.constant dense<0.000000e+00> : vector<6x384xf32>
    %14 = tpu.matmul %0, %13, %cst_12 {dimension_numbers = #tpu.dot_dimension_numbers<[1], [0], [0], [1], [0, 0, 1, 1], [], []>} : vector<6x32xbf16>, vector<32x384xbf16>, vector<6x384xf32> -> vector<6x384xf32>
    %15 = arith.maximumf %11, %14 : vector<6x384xf32>
    %c0_13 = arith.constant 0 : index
    %c0_14 = arith.constant 0 : index
    %16 = vector.load %arg3[%c0_13, %c0_14] : memref<6x1xf32, #tpu.memory_space<vmem>>, vector<6x1xf32>
    %17 = vector.broadcast %16 : vector<6x1xf32> to vector<6x384xf32>
    %18 = arith.addf %15, %17 : vector<6x384xf32>
    %cst_15 = arith.constant 0.000000e+00 : f32
    %19 = vector.broadcast %cst_15 : f32 to vector<6x384xf32>
    %20 = arith.cmpf oge, %18, %19 : vector<6x384xf32>
    %cst_16 = arith.constant 0.00999999977 : f32
    %21 = vector.broadcast %cst_16 : f32 to vector<6x384xf32>
    %22 = arith.mulf %21, %18 : vector<6x384xf32>
    %23 = arith.select %20, %18, %22 : vector<6x384xi1>, vector<6x384xf32>
    %c0_17 = arith.constant 0 : index
    %c0_18 = arith.constant 0 : index
    %24 = vector.load %arg4[%c0_17, %c0_18] : memref<6x384xf32, #tpu.memory_space<vmem>>, vector<6x384xf32>
    tpu.vector_store %arg4[%c0_17, %c0_18], %23 {strides = array<i32>} : memref<6x384xf32, #tpu.memory_space<vmem>>, vector<6x384xf32>,
    return
  }
  func.func @transform_0(%arg0: i32) -> (i32, i32, i32) {
    %c0_i32 = arith.constant 0 : i32
    %c0_i32_0 = arith.constant 0 : i32
    %c0_i32_1 = arith.constant 0 : i32
    return %c0_i32, %c0_i32_0, %arg0 : i32, i32, i32
  }
  func.func @transform_1(%arg0: i32) -> (i32, i32) {
    %c0_i32 = arith.constant 0 : i32
    %c0_i32_0 = arith.constant 0 : i32
    %c0_i32_1 = arith.constant 0 : i32
    return %c0_i32, %c0_i32_0 : i32, i32
  }
  func.func @transform_2(%arg0: i32) -> (i32, i32) {
    %c0_i32 = arith.constant 0 : i32
    %c0_i32_0 = arith.constant 0 : i32
    %c0_i32_1 = arith.constant 0 : i32
    return %c0_i32, %c0_i32_0 : i32, i32
  }
  func.func @transform_3(%arg0: i32) -> (i32, i32) {
    %c0_i32 = arith.constant 0 : i32
    %c0_i32_0 = arith.constant 0 : i32
    return %c0_i32, %arg0 : i32, i32
  }
}

module attributes {stable_mosaic.version = 11 : i64} {
  func.func @_conv_bn_lrelu_pool_kernel(%arg0: i32, %arg1: memref<4x152x128xbf16, #tpu.memory_space<vmem>>, %arg2: memref<16x152xbf16, #tpu.memory_space<vmem>>, %arg3: memref<16x1xf32, #tpu.memory_space<vmem>>, %arg4: memref<16x128xf32, #tpu.memory_space<vmem>>) attributes {dimension_semantics = [#tpu.dimension_semantics<parallel>], iteration_bounds = array<i64: 1>, scalar_prefetch = 0 : i64, scratch_operands = 0 : i64, tpu.core_type = #tpu.core_type<tc>, window_params = [{transform_indices = @transform_0, window_bounds = array<i64: 4, 152, 128>}, {pipeline_mode = #tpu.pipeline_mode<synchronous>, transform_indices = @transform_1, window_bounds = array<i64: 16, 152>}, {pipeline_mode = #tpu.pipeline_mode<synchronous>, transform_indices = @transform_2, window_bounds = array<i64: 16, 1>}, {transform_indices = @transform_3, window_bounds = array<i64: 16, 128>}]} {
    %c0 = arith.constant 0 : index
    %c0_0 = arith.constant 0 : index
    %0 = vector.load %arg2[%c0, %c0_0] : memref<16x152xbf16, #tpu.memory_space<vmem>>, vector<16x152xbf16>
    %c0_1 = arith.constant 0 : index
    %c0_2 = arith.constant 0 : index
    %c0_3 = arith.constant 0 : index
    %1 = vector.load %arg1[%c0_1, %c0_2, %c0_3] : memref<4x152x128xbf16, #tpu.memory_space<vmem>>, vector<1x152x128xbf16>
    %2 = vector.shape_cast %1 : vector<1x152x128xbf16> to vector<152x128xbf16>
    %cst = arith.constant dense<0.000000e+00> : vector<16x128xf32>
    %3 = tpu.matmul %0, %2, %cst {dimension_numbers = #tpu.dot_dimension_numbers<[1], [0], [0], [1], [0, 0, 1, 1], [], []>} : vector<16x152xbf16>, vector<152x128xbf16>, vector<16x128xf32> -> vector<16x128xf32>
    %c1 = arith.constant 1 : index
    %c0_4 = arith.constant 0 : index
    %c0_5 = arith.constant 0 : index
    %4 = vector.load %arg1[%c1, %c0_4, %c0_5] : memref<4x152x128xbf16, #tpu.memory_space<vmem>>, vector<1x152x128xbf16>
    %5 = vector.shape_cast %4 : vector<1x152x128xbf16> to vector<152x128xbf16>
    %cst_6 = arith.constant dense<0.000000e+00> : vector<16x128xf32>
    %6 = tpu.matmul %0, %5, %cst_6 {dimension_numbers = #tpu.dot_dimension_numbers<[1], [0], [0], [1], [0, 0, 1, 1], [], []>} : vector<16x152xbf16>, vector<152x128xbf16>, vector<16x128xf32> -> vector<16x128xf32>
    %7 = arith.maximumf %3, %6 : vector<16x128xf32>
    %c2 = arith.constant 2 : index
    %c0_7 = arith.constant 0 : index
    %c0_8 = arith.constant 0 : index
    %8 = vector.load %arg1[%c2, %c0_7, %c0_8] : memref<4x152x128xbf16, #tpu.memory_space<vmem>>, vector<1x152x128xbf16>
    %9 = vector.shape_cast %8 : vector<1x152x128xbf16> to vector<152x128xbf16>
    %cst_9 = arith.constant dense<0.000000e+00> : vector<16x128xf32>
    %10 = tpu.matmul %0, %9, %cst_9 {dimension_numbers = #tpu.dot_dimension_numbers<[1], [0], [0], [1], [0, 0, 1, 1], [], []>} : vector<16x152xbf16>, vector<152x128xbf16>, vector<16x128xf32> -> vector<16x128xf32>
    %11 = arith.maximumf %7, %10 : vector<16x128xf32>
    %c3 = arith.constant 3 : index
    %c0_10 = arith.constant 0 : index
    %c0_11 = arith.constant 0 : index
    %12 = vector.load %arg1[%c3, %c0_10, %c0_11] : memref<4x152x128xbf16, #tpu.memory_space<vmem>>, vector<1x152x128xbf16>
    %13 = vector.shape_cast %12 : vector<1x152x128xbf16> to vector<152x128xbf16>
    %cst_12 = arith.constant dense<0.000000e+00> : vector<16x128xf32>
    %14 = tpu.matmul %0, %13, %cst_12 {dimension_numbers = #tpu.dot_dimension_numbers<[1], [0], [0], [1], [0, 0, 1, 1], [], []>} : vector<16x152xbf16>, vector<152x128xbf16>, vector<16x128xf32> -> vector<16x128xf32>
    %15 = arith.maximumf %11, %14 : vector<16x128xf32>
    %c0_13 = arith.constant 0 : index
    %c0_14 = arith.constant 0 : index
    %16 = vector.load %arg3[%c0_13, %c0_14] : memref<16x1xf32, #tpu.memory_space<vmem>>, vector<16x1xf32>
    %17 = vector.broadcast %16 : vector<16x1xf32> to vector<16x128xf32>
    %18 = arith.addf %15, %17 : vector<16x128xf32>
    %cst_15 = arith.constant 0.000000e+00 : f32
    %19 = vector.broadcast %cst_15 : f32 to vector<16x128xf32>
    %20 = arith.cmpf oge, %18, %19 : vector<16x128xf32>
    %cst_16 = arith.constant 0.00999999977 : f32
    %21 = vector.broadcast %cst_16 : f32 to vector<16x128xf32>
    %22 = arith.mulf %21, %18 : vector<16x128xf32>
    %23 = arith.select %20, %18, %22 : vector<16x128xi1>, vector<16x128xf32>
    %c0_17 = arith.constant 0 : index
    %c0_18 = arith.constant 0 : index
    %24 = vector.load %arg4[%c0_17, %c0_18] : memref<16x128xf32, #tpu.memory_space<vmem>>, vector<16x128xf32>
    tpu.vector_store %arg4[%c0_17, %c0_18], %23 {strides = array<i32>} : memref<16x128xf32, #tpu.memory_space<vmem>>, vector<16x128xf32>,
    return
  }
  func.func @transform_0(%arg0: i32) -> (i32, i32, i32) {
    %c0_i32 = arith.constant 0 : i32
    %c0_i32_0 = arith.constant 0 : i32
    %c0_i32_1 = arith.constant 0 : i32
    return %c0_i32, %c0_i32_0, %arg0 : i32, i32, i32
  }
  func.func @transform_1(%arg0: i32) -> (i32, i32) {
    %c0_i32 = arith.constant 0 : i32
    %c0_i32_0 = arith.constant 0 : i32
    %c0_i32_1 = arith.constant 0 : i32
    return %c0_i32, %c0_i32_0 : i32, i32
  }
  func.func @transform_2(%arg0: i32) -> (i32, i32) {
    %c0_i32 = arith.constant 0 : i32
    %c0_i32_0 = arith.constant 0 : i32
    %c0_i32_1 = arith.constant 0 : i32
    return %c0_i32, %c0_i32_0 : i32, i32
  }
  func.func @transform_3(%arg0: i32) -> (i32, i32) {
    %c0_i32 = arith.constant 0 : i32
    %c0_i32_0 = arith.constant 0 : i32
    return %c0_i32, %arg0 : i32, i32
  }
}

module attributes {stable_mosaic.version = 11 : i64} {
  func.func @_mlp_kernel(%arg0: i32, %arg1: memref<8x256xf32, #tpu.memory_space<vmem>>, %arg2: memref<256x128xf32, #tpu.memory_space<vmem>>, %arg3: memref<1x128xf32, #tpu.memory_space<vmem>>, %arg4: memref<128x64xf32, #tpu.memory_space<vmem>>, %arg5: memref<1x64xf32, #tpu.memory_space<vmem>>, %arg6: memref<64x10xf32, #tpu.memory_space<vmem>>, %arg7: memref<1x10xf32, #tpu.memory_space<vmem>>, %arg8: memref<8x10xf32, #tpu.memory_space<vmem>>) attributes {dimension_semantics = [#tpu.dimension_semantics<parallel>], iteration_bounds = array<i64: 1>, scalar_prefetch = 0 : i64, scratch_operands = 0 : i64, tpu.core_type = #tpu.core_type<tc>, window_params = [{transform_indices = @transform_0, window_bounds = array<i64: 8, 256>}, {pipeline_mode = #tpu.pipeline_mode<synchronous>, transform_indices = @transform_1, window_bounds = array<i64: 256, 128>}, {pipeline_mode = #tpu.pipeline_mode<synchronous>, transform_indices = @transform_2, window_bounds = array<i64: 1, 128>}, {pipeline_mode = #tpu.pipeline_mode<synchronous>, transform_indices = @transform_3, window_bounds = array<i64: 128, 64>}, {pipeline_mode = #tpu.pipeline_mode<synchronous>, transform_indices = @transform_4, window_bounds = array<i64: 1, 64>}, {pipeline_mode = #tpu.pipeline_mode<synchronous>, transform_indices = @transform_5, window_bounds = array<i64: 64, 10>}, {pipeline_mode = #tpu.pipeline_mode<synchronous>, transform_indices = @transform_6, window_bounds = array<i64: 1, 10>}, {transform_indices = @transform_7, window_bounds = array<i64: 8, 10>}]} {
    %c0 = arith.constant 0 : index
    %c0_0 = arith.constant 0 : index
    %0 = vector.load %arg1[%c0, %c0_0] : memref<8x256xf32, #tpu.memory_space<vmem>>, vector<8x256xf32>
    %c0_1 = arith.constant 0 : index
    %c0_2 = arith.constant 0 : index
    %1 = vector.load %arg2[%c0_1, %c0_2] : memref<256x128xf32, #tpu.memory_space<vmem>>, vector<256x128xf32>
    %cst = arith.constant dense<0.000000e+00> : vector<8x128xf32>
    %2 = tpu.matmul %0, %1, %cst {dimension_numbers = #tpu.dot_dimension_numbers<[1], [0], [0], [1], [0, 0, 1, 1], [], []>} : vector<8x256xf32>, vector<256x128xf32>, vector<8x128xf32> -> vector<8x128xf32>
    %c0_3 = arith.constant 0 : index
    %c0_4 = arith.constant 0 : index
    %3 = vector.load %arg3[%c0_3, %c0_4] : memref<1x128xf32, #tpu.memory_space<vmem>>, vector<1x128xf32>
    %4 = vector.broadcast %3 : vector<1x128xf32> to vector<8x128xf32>
    %5 = arith.addf %2, %4 : vector<8x128xf32>
    %cst_5 = arith.constant 0.000000e+00 : f32
    %6 = vector.broadcast %cst_5 : f32 to vector<8x128xf32>
    %7 = arith.cmpf oge, %5, %6 : vector<8x128xf32>
    %cst_6 = arith.constant 0.00999999977 : f32
    %8 = vector.broadcast %cst_6 : f32 to vector<8x128xf32>
    %9 = arith.mulf %8, %5 : vector<8x128xf32>
    %10 = arith.select %7, %5, %9 : vector<8x128xi1>, vector<8x128xf32>
    %c0_7 = arith.constant 0 : index
    %c0_8 = arith.constant 0 : index
    %11 = vector.load %arg4[%c0_7, %c0_8] : memref<128x64xf32, #tpu.memory_space<vmem>>, vector<128x64xf32>
    %cst_9 = arith.constant dense<0.000000e+00> : vector<8x64xf32>
    %12 = tpu.matmul %10, %11, %cst_9 {dimension_numbers = #tpu.dot_dimension_numbers<[1], [0], [0], [1], [0, 0, 1, 1], [], []>} : vector<8x128xf32>, vector<128x64xf32>, vector<8x64xf32> -> vector<8x64xf32>
    %c0_10 = arith.constant 0 : index
    %c0_11 = arith.constant 0 : index
    %13 = vector.load %arg5[%c0_10, %c0_11] : memref<1x64xf32, #tpu.memory_space<vmem>>, vector<1x64xf32>
    %14 = vector.broadcast %13 : vector<1x64xf32> to vector<8x64xf32>
    %15 = arith.addf %12, %14 : vector<8x64xf32>
    %c0_12 = arith.constant 0 : index
    %c0_13 = arith.constant 0 : index
    %16 = vector.load %arg6[%c0_12, %c0_13] : memref<64x10xf32, #tpu.memory_space<vmem>>, vector<64x10xf32>
    %cst_14 = arith.constant dense<0.000000e+00> : vector<8x10xf32>
    %17 = tpu.matmul %15, %16, %cst_14 {dimension_numbers = #tpu.dot_dimension_numbers<[1], [0], [0], [1], [0, 0, 1, 1], [], []>} : vector<8x64xf32>, vector<64x10xf32>, vector<8x10xf32> -> vector<8x10xf32>
    %c0_15 = arith.constant 0 : index
    %c0_16 = arith.constant 0 : index
    %18 = vector.load %arg7[%c0_15, %c0_16] : memref<1x10xf32, #tpu.memory_space<vmem>>, vector<1x10xf32>
    %19 = vector.broadcast %18 : vector<1x10xf32> to vector<8x10xf32>
    %20 = arith.addf %17, %19 : vector<8x10xf32>
    %c0_17 = arith.constant 0 : index
    %c0_18 = arith.constant 0 : index
    %21 = vector.load %arg8[%c0_17, %c0_18] : memref<8x10xf32, #tpu.memory_space<vmem>>, vector<8x10xf32>
    tpu.vector_store %arg8[%c0_17, %c0_18], %20 {strides = array<i32>} : memref<8x10xf32, #tpu.memory_space<vmem>>, vector<8x10xf32>,
    return
  }
  func.func @transform_0(%arg0: i32) -> (i32, i32) {
    %c0_i32 = arith.constant 0 : i32
    %c0_i32_0 = arith.constant 0 : i32
    return %arg0, %c0_i32 : i32, i32
  }
  func.func @transform_1(%arg0: i32) -> (i32, i32) {
    %c0_i32 = arith.constant 0 : i32
    %c0_i32_0 = arith.constant 0 : i32
    %c0_i32_1 = arith.constant 0 : i32
    return %c0_i32, %c0_i32_0 : i32, i32
  }
  func.func @transform_2(%arg0: i32) -> (i32, i32) {
    %c0_i32 = arith.constant 0 : i32
    %c0_i32_0 = arith.constant 0 : i32
    %c0_i32_1 = arith.constant 0 : i32
    return %c0_i32, %c0_i32_0 : i32, i32
  }
  func.func @transform_3(%arg0: i32) -> (i32, i32) {
    %c0_i32 = arith.constant 0 : i32
    %c0_i32_0 = arith.constant 0 : i32
    %c0_i32_1 = arith.constant 0 : i32
    return %c0_i32, %c0_i32_0 : i32, i32
  }
  func.func @transform_4(%arg0: i32) -> (i32, i32) {
    %c0_i32 = arith.constant 0 : i32
    %c0_i32_0 = arith.constant 0 : i32
    %c0_i32_1 = arith.constant 0 : i32
    return %c0_i32, %c0_i32_0 : i32, i32
  }
  func.func @transform_5(%arg0: i32) -> (i32, i32) {
    %c0_i32 = arith.constant 0 : i32
    %c0_i32_0 = arith.constant 0 : i32
    %c0_i32_1 = arith.constant 0 : i32
    return %c0_i32, %c0_i32_0 : i32, i32
  }
  func.func @transform_6(%arg0: i32) -> (i32, i32) {
    %c0_i32 = arith.constant 0 : i32
    %c0_i32_0 = arith.constant 0 : i32
    %c0_i32_1 = arith.constant 0 : i32
    return %c0_i32, %c0_i32_0 : i32, i32
  }
  func.func @transform_7(%arg0: i32) -> (i32, i32) {
    %c0_i32 = arith.constant 0 : i32
    %c0_i32_0 = arith.constant 0 : i32
    return %arg0, %c0_i32 : i32, i32
  }
}

</mosaic_0001>

<bundles_post_ra>
// kernel: lenet_forward.3
= control target key start
LH: loop header
LB: loop body
LE: loop exit
PB: predicated region body
PF: predicated region fallthrough
CT: control target
= control target key end

     0   :  { %vm56_vm0 = vcmask 261120   ;;  %s737_s0 = inlined_call_operand.vmem [shape: bf16[4,32,384], index: 0, kind: input, shape index: {}]   ;;  %s738_s1 = inlined_call_operand.vmem [shape: bf16[6,32], index: 1, kind: input, shape index: {}]   ;;  %s739_s2 = inlined_call_operand.vmem [shape: f32[6,1], index: 2, kind: input, shape index: {}]   ;;  %s740_s3 = inlined_call_operand.vmem [shape: f32[6,384], index: 3, kind: output, shape index: {}]  }
   0x1   :  { %v387_v0 = vld [vmem:[%s737_s0 + $0x18] sm:$0xf]  ;;  %v509_v1 = vld [vmem:[%s737_s0 + $0x20] sm:$0xf0]  ;;  %v508_v2 = vld [vmem:[%s737_s0 + $0x1c] sm:$0xf] }
   0x2   :  { %v388_v3 = vor.u32 %v509_v1, %v387_v0  ;;  %v389_v4 = vld [vmem:[%s737_s0 + $0x24] sm:$0xf0]  ;;  %v395_v5 = vld [vmem:[%s737_s0 + $0x20] sm:$0xf]  ;;  %v510_v6 = vld [vmem:[%s737_s0 + $0x28] sm:$0xf0] }
   0x3   :  { %v392_v7 = vor.u32 %v508_v2, %v389_v4  ;;  %v396_v8 = vor.u32 %v510_v6, %v395_v5  ;;  %v422_v9 = vld [vmem:[%s737_s0 + $0x48] sm:$0xf]  ;;  %v515_v10 = vld [vmem:[%s737_s0 + $0x50] sm:$0xf0]  ;;  %v375_v11 = vld [vmem:[%s737_s0] sm:$0xf] }
   0x4   :  { %66 = vmatpush.bf16.msra.mxu0 %v388_v3  ;;  %v423_v12 = vor.u32 %v515_v10, %v422_v9  ;;  %v506_v13 = vld [vmem:[%s737_s0 + $0x8] sm:$0xf0]  ;;  %v505_v14 = vld [vmem:[%s737_s0 + $0x4] sm:$0xf]  ;;  %v377_v15 = vld [vmem:[%s737_s0 + $0xc] sm:$0xf0] }
   0x5   :  { %79 = vmatpush.bf16.msra.mxu1 %v392_v7  ;;  %92 = vmatpush.bf16.msra.mxu2 %v396_v8  ;;  %v376_v16 = vor.u32 %v506_v13, %v375_v11  ;;  %v380_v17 = vor.u32 %v505_v14, %v377_v15  ;;  %v383_v18 = vld [vmem:[%s737_s0 + $0x8] sm:$0xf]  ;;  %v507_v19 = vld [vmem:[%s737_s0 + $0x10] sm:$0xf0]  ;;  %v410_v20 = vld [vmem:[%s737_s0 + $0x30] sm:$0xf] }
   0x6   :  { %146 = vmatpush.bf16.msra.mxu3 %v423_v12  ;;  %v384_v21 = vor.u32 %v507_v19, %v383_v18  ;;  %v512_v22 = vld [vmem:[%s737_s0 + $0x38] sm:$0xf0]  ;;  %v603_v23 = vld [vmem:[%s738_s1] sm:$0x7]  ;;  %v457_v24 = vld [vmem:[%s737_s0 + $0x78] sm:$0xf] }
   0x7   :  { %v411_v25 = vor.u32 %v512_v22, %v410_v20  ;;  %v521_v26 = vld [vmem:[%s737_s0 + $0x80] sm:$0xf0]  ;;  %v520_v27 = vld [vmem:[%s737_s0 + $0x7c] sm:$0xf]  ;;  %v459_v28 = vld [vmem:[%s737_s0 + $0x84] sm:$0xf0] }
   0x8   :  { %67 = vmatpush.bf16.msra.mxu0 %v376_v16  ;;  %v458_v29 = vor.u32 %v521_v26, %v457_v24  ;;  %v462_v30 = vor.u32 %v520_v27, %v459_v28  ;;  %v514_v31 = vld [vmem:[%s737_s0 + $0x4c] sm:$0xf]  ;;  %v424_v32 = vld [vmem:[%s737_s0 + $0x54] sm:$0xf0]  ;;  %v430_v33 = vld [vmem:[%s737_s0 + $0x50] sm:$0xf] }
   0x9   :  { %80 = vmatpush.bf16.msra.mxu1 %v380_v17  ;;  %93 = vmatpush.bf16.msra.mxu2 %v384_v21  ;;  %v427_v34 = vor.u32 %v514_v31, %v424_v32  ;;  %v516_v35 = vld [vmem:[%s737_s0 + $0x58] sm:$0xf0]  ;;  %v445_v36 = vld [vmem:[%s737_s0 + $0x60] sm:$0xf]  ;;  %v518_v37 = vld [vmem:[%s737_s0 + $0x68] sm:$0xf0] }
   0xa   :  { %147 = vmatpush.bf16.msra.mxu3 %v411_v25  ;;  %v431_v38 = vor.u32 %v516_v35, %v430_v33  ;;  %v446_v39 = vor.u32 %v518_v37, %v445_v36  ;;  %v517_v40 = vld [vmem:[%s737_s0 + $0x64] sm:$0xf]  ;;  %v447_v41 = vld [vmem:[%s737_s0 + $0x6c] sm:$0xf0]  ;;  %v511_v42 = vld [vmem:[%s737_s0 + $0x34] sm:$0xf] }
   0xb   :  { %397 = vmatmul.msk.bf16.vlgmr.msra.gmra.mxu0 %vm56_vm0, %v603_v23  ;;  %v450_v43 = vor.u32 %v517_v40, %v447_v41  ;;  %v412_v44 = vld [vmem:[%s737_s0 + $0x3c] sm:$0xf0]  ;;  %v418_v45 = vld [vmem:[%s737_s0 + $0x38] sm:$0xf]  ;;  %v513_v46 = vld [vmem:[%s737_s0 + $0x40] sm:$0xf0] }
   0xc   :  { %398 = vmatmul.msk.bf16.vlgmr.msra.gmra.mxu1 %vm56_vm0, %v603_v23  ;;  %399 = vmatmul.msk.bf16.vlgmr.msra.gmra.mxu2 %vm56_vm0, %v603_v23  ;;  %v526_v47 = vld [vmem:[%s737_s0 + $0xac] sm:$0xf]  ;;  %v494_v48 = vld [vmem:[%s737_s0 + $0xb4] sm:$0xf0]  ;;  %v500_v49 = vld [vmem:[%s737_s0 + $0xb0] sm:$0xf]  ;;  %v415_v50 = vor.u32 %v511_v42, %v412_v44  ;;  %v419_v55 = vor.u32 %v513_v46, %v418_v45 }
   0xd   :  { %229 = vmatpush.bf16.msrb.mxu2 %v458_v29  ;;  %432 = vmatmul.msk.bf16.vlgmr.msra.gmra.mxu3 %vm56_vm0, %v603_v23  ;;  %v497_v51 = vor.u32 %v526_v47, %v494_v48  ;;  %v528_v52 = vld [vmem:[%s737_s0 + $0xb8] sm:$0xf0]  ;;  %v465_v53 = vld [vmem:[%s737_s0 + $0x80] sm:$0xf]  ;;  %v522_v54 = vld [vmem:[%s737_s0 + $0x88] sm:$0xf0] }
   0xe   :  { %242 = vmatpush.bf16.msrb.mxu3 %v462_v30  ;;  %159 = vmatpush.bf16.msrb.mxu0 %v427_v34  ;;  %v501_v56 = vor.u32 %v528_v52, %v500_v49  ;;  %v466_v57 = vor.u32 %v522_v54, %v465_v53  ;;  %v492_v58 = vld [vmem:[%s737_s0 + $0xa8] sm:$0xf]  ;;  %v527_v59 = vld [vmem:[%s737_s0 + $0xb0] sm:$0xf0]  ;;  %v482_v62 = vld [vmem:[%s737_s0 + $0x9c] sm:$0xf0] }
   0xf   :  { %172 = vmatpush.bf16.msrb.mxu1 %v431_v38  ;;  %v523_v60 = vld [vmem:[%s737_s0 + $0x94] sm:$0xf]  ;;  %v493_v61 = vor.u32 %v527_v59, %v492_v58  ;;  %v488_v63 = vld [vmem:[%s737_s0 + $0x98] sm:$0xf]  ;;  %v525_v0 = vld [vmem:[%s737_s0 + $0xa0] sm:$0xf0] }
  0x10   :  { %v485_v1 = vor.u32 %v523_v60, %v482_v62  ;;  %v489_v2 = vor.u32 %v525_v0, %v488_v63  ;;  %v453_v3 = vld [vmem:[%s737_s0 + $0x68] sm:$0xf]  ;;  %v519_v4 = vld [vmem:[%s737_s0 + $0x70] sm:$0xf0]  ;;  %v480_v5 = vld [vmem:[%s737_s0 + $0x90] sm:$0xf] }
  0x11   :  { %230 = vmatpush.bf16.msrb.mxu2 %v446_v39  ;;  %v524_v6 = vld [vmem:[%s737_s0 + $0x98] sm:$0xf0]  ;;  %v454_v7 = vor.u32 %v519_v4, %v453_v3  ;;  %v348_v8 = vld [vmem:[%s739_s2] sm:$0x3f]  ;;  %v531_v10 = vmov 0  }
  0x12   :  { %243 = vmatpush.bf16.msrb.mxu3 %v450_v43  ;;  %160 = vmatpush.bf16.msrb.mxu0 %v415_v50  ;;  %v481_v9 = vor.u32 %v524_v6, %v480_v5 }
  0x13   :  { %173 = vmatpush.bf16.msrb.mxu1 %v419_v55  ;;  %530 = vset.pattern.permute.xlu0 %v531_v10 }
  0x14   :  { %351 = vperm.xlu0 %530, %v348_v8  }
  0x15   :  { %325 = vmatpush.bf16.msra.mxu2 %v497_v51 }
  0x16   :  { %338 = vmatpush.bf16.msra.mxu3 %v501_v56  ;;  %255 = vmatpush.bf16.msra.mxu0 %v466_v57 }
  0x17   :  { %312 = vmatpush.bf16.msra.mxu1 %v493_v61 }
  0x19   :  { %326 = vmatpush.bf16.msra.mxu2 %v485_v1 }
  0x1a   :  { %339 = vmatpush.bf16.msra.mxu3 %v489_v2  ;;  %256 = vmatpush.bf16.msra.mxu0 %v454_v7 }
  0x1b   :  { %313 = vmatpush.bf16.msra.mxu1 %v481_v9  ;;  %433 = vmatmul.msk.bf16.vlgmr.msrb.gmra.mxu0 %vm56_vm0, %v603_v23 }
  0x1c   :  { %434 = vmatmul.msk.bf16.vlgmr.msrb.gmra.mxu1 %vm56_vm0, %v603_v23  ;;  %467 = vmatmul.msk.bf16.vlgmr.msrb.gmra.mxu2 %vm56_vm0, %v603_v23 }
  0x1d   :  { %468 = vmatmul.msk.bf16.vlgmr.msrb.gmra.mxu3 %vm56_vm0, %v603_v23 }
  0x2b   :  { %469 = vmatmul.msk.bf16.vlgmr.msra.gmra.mxu0 %vm56_vm0, %v603_v23 }
  0x2c   :  { %502 = vmatmul.msk.bf16.vlgmr.msra.gmra.mxu1 %vm56_vm0, %v603_v23  ;;  %503 = vmatmul.msk.bf16.vlgmr.msra.gmra.mxu2 %vm56_vm0, %v603_v23 }
  0x2d   :  { %504 = vmatmul.msk.bf16.vlgmr.msra.gmra.mxu3 %vm56_vm0, %v603_v23 }
  0x86   :  { %v352_v31 = vpop.permute.xlu0 %351 }
  0x88   :  { %v69_v11 = vpop.f32.mrf.mxu0 }
  0x89   :  { %v82_v12 = vpop.f32.mrf.mxu1 }
  0x8f   :  { %v95_v13 = vpop.f32.mrf.mxu2 }
  0x90   :  { %v149_v14 = vpop.f32.mrf.mxu3  ;;  %v71_v15 = vpop.f32.mrf.mxu0 }
  0x91   :  { %v84_v16 = vpop.f32.mrf.mxu1  ;;  %v179_v26 = vmax.f32 %v69_v11, %v149_v14 }
  0x97   :  { %v97_v17 = vpop.f32.mrf.mxu2 }
  0x98   :  { %v151_v18 = vpop.f32.mrf.mxu3  ;;  %v162_v19 = vpop.f32.mrf.mxu0 }
  0x99   :  { %v175_v20 = vpop.f32.mrf.mxu1  ;;  %v180_v33 = vmax.f32 %v82_v12, %v162_v19 }
  0x9a   :  { %v181_v35 = vmax.f32 %v95_v13, %v175_v20 }
  0x9f   :  { %v232_v21 = vpop.f32.mrf.mxu2 }
  0xa0   :  { %v245_v22 = vpop.f32.mrf.mxu3  ;;  %v164_v24 = vpop.f32.mrf.mxu0  ;;  %v262_v28 = vmax.f32 %v179_v26, %v232_v21 }
  0xa1   :  { %v177_v25 = vpop.f32.mrf.mxu1  ;;  %v263_v36 = vmax.f32 %v180_v33, %v245_v22 }
  0xa7   :  { %v234_v27 = vpop.f32.mrf.mxu2 }
  0xa8   :  { %v247_v29 = vpop.f32.mrf.mxu3  ;;  %v258_v30 = vpop.f32.mrf.mxu0 }
  0xa9   :  { %v315_v23 = vpop.f32.mrf.mxu1  ;;  %v264_v38 = vmax.f32 %v181_v35, %v258_v30 }
  0xaa   :  { %v345_v32 = vmax.f32 %v262_v28, %v315_v23 }
  0xac   :  { %v354_v34 = vadd.f32 %v352_v31, %v345_v32 }
  0xae   :  { %vm357_vm1 = vcmp.ge.f32.partialorder %v354_v34, 0.0  ;;  %v360_v37 = vmul.f32 0.01, %v354_v34 }
  0xaf   :  { %v328_v39 = vpop.f32.mrf.mxu2 }
  0xb0   :  { %v363_v40 = vsel %vm357_vm1, %v354_v34, %v360_v37  ;;  %v346_v41 = vmax.f32 %v263_v36, %v328_v39  ;;  %v341_v42 = vpop.f32.mrf.mxu3  ;;  %v260_v43 = vpop.f32.mrf.mxu0 }
  0xb1   :  { %366 = vst [vmem:[%s740_s3] sm:$0x3f] %v363_v40  ;;  %v347_v44 = vmax.f32 %v264_v38, %v341_v42  ;;  %v317_v45 = vpop.f32.mrf.mxu1 }
  0xb2   :  { %v355_v46 = vadd.f32 %v352_v31, %v346_v41 }
  0xb3   :  { %v356_v47 = vadd.f32 %v352_v31, %v347_v44 }
  0xb4   :  { %vm358_vm2 = vcmp.ge.f32.partialorder %v355_v46, 0.0  ;;  %v361_v48 = vmul.f32 0.01, %v355_v46 }
  0xb5   :  { %vm359_vm3 = vcmp.ge.f32.partialorder %v356_v47, 0.0  ;;  %v362_v49 = vmul.f32 0.01, %v356_v47 }
  0xb6   :  { %v364_v50 = vsel %vm358_vm2, %v355_v46, %v361_v48 }
  0xb7   :  { %367 = vst [vmem:[%s740_s3 + $0x8] sm:$0x3f] %v364_v50  ;;  %v365_v51 = vsel %vm359_vm3, %v356_v47, %v362_v49  ;;  %v330_v52 = vpop.f32.mrf.mxu2 }
  0xb8   :  { %368 = vst [vmem:[%s740_s3 + $0x10] sm:$0x3f] %v365_v51  ;;  %v343_v53 = vpop.f32.mrf.mxu3 }

// kernel: lenet_forward.4
= control target key start
LH: loop header
LB: loop body
LE: loop exit
PB: predicated region body
PF: predicated region fallthrough
CT: control target
= control target key end

     0   :  { %vm106_vm0 = vcmask 1043456   ;;  %vm102_vm1 = vcmask 195584   ;;  %v747_v35 = vmov 0   ;;  %s926_s0 = inlined_call_operand.vmem [shape: bf16[4,152,128], index: 0, kind: input, shape index: {}]   ;;  %s927_s1 = inlined_call_operand.vmem [shape: bf16[16,152], index: 1, kind: input, shape index: {}]   ;;  %s928_s2 = inlined_call_operand.vmem [shape: f32[16,1], index: 2, kind: input, shape index: {}]   ;;  %s929_s3 = inlined_call_operand.vmem [shape: f32[16,128], index: 3, kind: output, shape index: {}]  }
   0x1   :  { %v716_v0 = vld [vmem:[%s926_s0 + $0x38] sm:$0xff]  ;;  %v725_v1 = vld [vmem:[%s926_s0 + $0x84] sm:$0xff]  ;;  %v715_v4 = vld [vmem:[%s926_s0 + $0x30] sm:$0xff]  ;;  %746 = vset.pattern.permute.xlu0 %v747_v35 }
   0x2   :  { %v35_v2 = vld [vmem:[%s926_s0 + $0x48] sm:$0xf]  ;;  %110 = vmatpush.bf16.msra.mxu0 %v716_v0  ;;  %218 = vmatpush.bf16.msra.mxu2 %v725_v1  ;;  %v613_v5 = vld [vmem:[%s926_s0 + $0xe0] sm:$0xf]  ;;  %v723_v14 = vld [vmem:[%s926_s0 + $0x74] sm:$0xff] }
   0x3   :  { %v82_v3 = vunpack.c.l.b16 %v35_v2  ;;  %v724_v7 = vld [vmem:[%s926_s0 + $0x7c] sm:$0xff]  ;;  %v305_v8 = vunpack.c.l.b16 %v613_v5  ;;  %v714_v12 = vld [vmem:[%s926_s0 + $0x28] sm:$0xff]  ;;  %v734_v15 = vld [vmem:[%s926_s0 + $0xd0] sm:$0xff] }
   0x4   :  { %v717_v11 = vld [vmem:[%s926_s0 + $0x40] sm:$0xff]  ;;  %v735_v17 = vld [vmem:[%s926_s0 + $0xd8] sm:$0xff]  ;;  %v498_v18 = vld [vmem:[%s927_s1 + $0x8] sm:$0xf0] }
   0x5   :  { %v92_v6 = vpack.c.b16 %v82_v3, %v82_v3  ;;  %v315_v10 = vpack.c.b16 %v305_v8, %v305_v8  ;;  %v707_v16 = vld [vmem:[%s927_s1 + $0x4] sm:$0xf]  ;;  %v743_v19 = vld [vmem:[%s926_s0 + $0x11c] sm:$0xff]  ;;  %v722_v22 = vld [vmem:[%s926_s0 + $0x6c] sm:$0xff] }
   0x6   :  { %111 = vmatpush.bf16.msra.mxu0 %v715_v4  ;;  %219 = vmatpush.bf16.msra.mxu2 %v724_v7  ;;  %v812_v20 = vor.u32 %v707_v16, %v498_v18  ;;  %v713_v21 = vld [vmem:[%s926_s0 + $0x20] sm:$0xff]  ;;  %v733_v23 = vld [vmem:[%s926_s0 + $0xc8] sm:$0xff]  ;;  %v742_v24 = vld [vmem:[%s926_s0 + $0x114] sm:$0xff] }
   0x7   :  { %v108_v9 = vsel %vm106_vm0, %v92_v6, 0  ;;  %v326_v13 = vsel %vm106_vm0, %v315_v10, 0  ;;  %v712_v25 = vld [vmem:[%s926_s0 + $0x18] sm:$0xff]  ;;  %v721_v26 = vld [vmem:[%s926_s0 + $0x64] sm:$0xff]  ;;  %v711_v28 = vld [vmem:[%s926_s0 + $0x10] sm:$0xff] }
   0x8   :  { %130 = vmatpush.bf16.msra.mxu1 %v108_v9  ;;  %348 = vmatpush.bf16.msra.mxu3 %v326_v13  ;;  %v732_v27 = vld [vmem:[%s926_s0 + $0xc0] sm:$0xff]  ;;  %v741_v29 = vld [vmem:[%s926_s0 + $0x10c] sm:$0xff]  ;;  %v557_v30 = vld [vmem:[%s926_s0 + $0x94] sm:$0xf] }
   0x9   :  { %v669_v31 = vld [vmem:[%s926_s0 + $0x12c] sm:$0xf]  ;;  %v468_v32 = vld [vmem:[%s928_s2] sm:$0xff]  ;;  %v731_v34 = vld [vmem:[%s926_s0 + $0xb8] sm:$0xff]  ;;  %v195_v37 = vunpack.c.l.b16 %v557_v30 }
   0xa   :  { %112 = vmatpush.bf16.msra.mxu0 %v714_v12  ;;  %220 = vmatpush.bf16.msra.mxu2 %v723_v14  ;;  %v720_v33 = vld [vmem:[%s926_s0 + $0x5c] sm:$0xff]  ;;  %v740_v36 = vld [vmem:[%s926_s0 + $0x104] sm:$0xff]  ;;  %v415_v38 = vunpack.c.l.b16 %v669_v31  ;;  %v719_v40 = vld [vmem:[%s926_s0 + $0x54] sm:$0xff] }
   0xb   :  { %472 = vperm.xlu0 %746, %v468_v32   ;;  %v710_v39 = vld [vmem:[%s926_s0 + $0x8] sm:$0xff]  ;;  %v730_v41 = vld [vmem:[%s926_s0 + $0xb0] sm:$0xff]  ;;  %v709_v42 = vld [vmem:[%s926_s0] sm:$0xff]  ;;  %v205_v44 = vpack.c.b16 %v195_v37, %v195_v37 }
   0xc   :  { %131 = vmatpush.bf16.msra.mxu1 %v717_v11  ;;  %349 = vmatpush.bf16.msra.mxu3 %v735_v17  ;;  %v739_v43 = vld [vmem:[%s926_s0 + $0xfc] sm:$0xff]  ;;  %v425_v45 = vpack.c.b16 %v415_v38, %v415_v38  ;;  %v708_v47 = vld [vmem:[%s927_s1 + $0x4] sm:$0xf0]  ;;  %v718_v49 = vld [vmem:[%s926_s0 + $0x4c] sm:$0xff] }
   0xd   :  { %v496_v46 = vld [vmem:[%s927_s1] sm:$0xf]  ;;  %v469_v48 = vld [vmem:[%s928_s2 + $0x8] sm:$0xff]  ;;  %v216_v52 = vsel %vm106_vm0, %v205_v44, 0  ;;  %v738_v53 = vld [vmem:[%s926_s0 + $0xf4] sm:$0xff] }
   0xe   :  { %113 = vmatpush.bf16.msra.mxu0 %v713_v21  ;;  %221 = vmatpush.bf16.msra.mxu2 %v722_v22  ;;  %v729_v50 = vld [vmem:[%s926_s0 + $0xa8] sm:$0xff]  ;;  %v497_v51 = vor.u32 %v708_v47, %v496_v46  ;;  %v436_v54 = vsel %vm106_vm0, %v425_v45, 0  ;;  %v728_v55 = vld [vmem:[%s926_s0 + $0xa0] sm:$0xff]  ;;  %v727_v59 = vld [vmem:[%s926_s0 + $0x98] sm:$0xff] }
   0xf   :  { %538 = vmatmul.msk.bf16.vlgmr.msra.gmra.mxu1 %vm102_vm1, %v812_v20  ;;  %650 = vmatmul.msk.bf16.vlgmr.msra.gmra.mxu3 %vm102_vm1, %v812_v20  ;;  %v726_v56 = vld [vmem:[%s926_s0 + $0x8c] sm:$0xff]  ;;  %v744_v57 = vld [vmem:[%s926_s0 + $0x124] sm:$0xff] }
  0x10   :  { %328 = vmatpush.bf16.msrb.mxu1 %v734_v15  ;;  %438 = vmatpush.bf16.msrb.mxu3 %v743_v19  ;;  %v737_v58 = vld [vmem:[%s926_s0 + $0xec] sm:$0xff]  ;;  %v736_v60 = vld [vmem:[%s926_s0 + $0xe4] sm:$0xff] }
  0x12   :  { %114 = vmatpush.bf16.msra.mxu0 %v712_v25  ;;  %222 = vmatpush.bf16.msra.mxu2 %v721_v26 }
  0x13   :  { %477 = vperm.xlu0 %746, %v469_v48  }
  0x14   :  { %329 = vmatpush.bf16.msrb.mxu1 %v733_v23  ;;  %439 = vmatpush.bf16.msrb.mxu3 %v742_v24 }
  0x16   :  { %115 = vmatpush.bf16.msra.mxu0 %v711_v28  ;;  %223 = vmatpush.bf16.msra.mxu2 %v720_v33 }
  0x18   :  { %330 = vmatpush.bf16.msrb.mxu1 %v732_v27  ;;  %440 = vmatpush.bf16.msrb.mxu3 %v741_v29 }
  0x1a   :  { %116 = vmatpush.bf16.msra.mxu0 %v710_v39  ;;  %224 = vmatpush.bf16.msra.mxu2 %v719_v40 }
  0x1c   :  { %331 = vmatpush.bf16.msrb.mxu1 %v731_v34  ;;  %441 = vmatpush.bf16.msrb.mxu3 %v740_v36 }
  0x1e   :  { %117 = vmatpush.bf16.msra.mxu0 %v709_v42  ;;  %225 = vmatpush.bf16.msra.mxu2 %v718_v49 }
  0x20   :  { %332 = vmatpush.bf16.msrb.mxu1 %v730_v41  ;;  %442 = vmatpush.bf16.msrb.mxu3 %v739_v43 }
  0x21   :  { %118 = vmatmul.bf16.vlgmr.msra.gmra.mxu0 %v497_v51  ;;  %226 = vmatmul.bf16.vlgmr.msra.gmra.mxu2 %v497_v51 }
  0x22   :  { %238 = vmatpush.bf16.msrb.mxu2 %v216_v52  ;;  %458 = vmatpush.bf16.msrb.mxu0 %v436_v54 }
  0x24   :  { %333 = vmatpush.bf16.msrb.mxu1 %v729_v50  ;;  %443 = vmatpush.bf16.msrb.mxu3 %v738_v53 }
  0x26   :  { %239 = vmatpush.bf16.msrb.mxu2 %v726_v56  ;;  %459 = vmatpush.bf16.msrb.mxu0 %v744_v57 }
  0x28   :  { %334 = vmatpush.bf16.msrb.mxu1 %v728_v55  ;;  %444 = vmatpush.bf16.msrb.mxu3 %v737_v58 }
  0x2c   :  { %335 = vmatpush.bf16.msrb.mxu1 %v727_v59  ;;  %445 = vmatpush.bf16.msrb.mxu3 %v736_v60 }
  0x2f   :  { %336 = vmatmul.bf16.vlgmr.msrb.gmra.mxu1 %v497_v51  ;;  %446 = vmatmul.bf16.vlgmr.msrb.gmra.mxu3 %v497_v51 }
  0x31   :  { %706 = vmatmul.msk.bf16.vlgmr.msrb.gmra.mxu0 %vm102_vm1, %v812_v20  ;;  %594 = vmatmul.msk.bf16.vlgmr.msrb.gmra.mxu2 %vm102_vm1, %v812_v20 }
  0x7d   :  { %v473_v15 = vpop.permute.xlu0 %472 }
  0x85   :  { %v478_v31 = vpop.permute.xlu0 %477 }
  0x8c   :  { %v133_v61 = vpop.f32.mrf.mxu1 }
  0x92   :  { %v351_v62 = vpop.f32.mrf.mxu3 }
  0x94   :  { %v135_v1 = vpop.f32.mrf.mxu1 }
  0x9a   :  { %v353_v2 = vpop.f32.mrf.mxu3 }
  0x9e   :  { %v119_v63 = vpop.f32.mrf.mxu0 }
  0x9f   :  { %v134_v9 = vadd.f32 %v133_v61, %v119_v63 }
  0xa4   :  { %v227_v0 = vpop.f32.mrf.mxu2 }
  0xa6   :  { %v121_v3 = vpop.f32.mrf.mxu0 }
  0xa7   :  { %v136_v19 = vadd.f32 %v135_v1, %v121_v3 }
  0xac   :  { %v229_v4 = vpop.f32.mrf.mxu2  ;;  %v337_v5 = vpop.f32.mrf.mxu1 }
  0xad   :  { %v352_v11 = vadd.f32 %v351_v62, %v337_v5 }
  0xae   :  { %v461_v6 = vpop.f32.mrf.mxu0 }
  0xb2   :  { %v447_v7 = vpop.f32.mrf.mxu3 }
  0xb3   :  { %v462_v12 = vadd.f32 %v461_v6, %v447_v7 }
  0xb4   :  { %v241_v8 = vpop.f32.mrf.mxu2  ;;  %v339_v17 = vpop.f32.mrf.mxu1 }
  0xb5   :  { %v242_v10 = vadd.f32 %v241_v8, %v227_v0  ;;  %v354_v24 = vadd.f32 %v353_v2, %v339_v17 }
  0xb6   :  { %v463_v23 = vpop.f32.mrf.mxu0 }
  0xb7   :  { %v246_v13 = vmax.f32 %v134_v9, %v242_v10 }
  0xb9   :  { %v356_v14 = vmax.f32 %v246_v13, %v352_v11 }
  0xba   :  { %v449_v22 = vpop.f32.mrf.mxu3 }
  0xbb   :  { %v466_v16 = vmax.f32 %v356_v14, %v462_v12  ;;  %v464_v28 = vadd.f32 %v463_v23, %v449_v22 }
  0xbc   :  { %v243_v18 = vpop.f32.mrf.mxu2 }
  0xbd   :  { %v480_v20 = vadd.f32 %v473_v15, %v466_v16  ;;  %v244_v21 = vadd.f32 %v243_v18, %v229_v4 }
  0xbf   :  { %vm482_vm2 = vcmp.ge.f32.partialorder %v480_v20, 0.0  ;;  %v484_v25 = vmul.f32 0.01, %v480_v20  ;;  %v247_v26 = vmax.f32 %v136_v19, %v244_v21 }
  0xc1   :  { %v486_v27 = vsel %vm482_vm2, %v480_v20, %v484_v25  ;;  %v357_v29 = vmax.f32 %v247_v26, %v354_v24 }
  0xc2   :  { %488 = vst [vmem:[%s929_s3] sm:$0xff] %v486_v27 }
  0xc3   :  { %v467_v30 = vmax.f32 %v357_v29, %v464_v28 }
  0xc5   :  { %v481_v32 = vadd.f32 %v478_v31, %v467_v30 }
  0xc7   :  { %vm483_vm3 = vcmp.ge.f32.partialorder %v481_v32, 0.0  ;;  %v485_v33 = vmul.f32 0.01, %v481_v32 }
  0xc9   :  { %v487_v34 = vsel %vm483_vm3, %v481_v32, %v485_v33 }
  0xca   :  { %489 = vst [vmem:[%s929_s3 + $0x8] sm:$0xff] %v487_v34 }

// kernel: lenet_forward.5
= control target key start
LH: loop header
LB: loop body
LE: loop exit
PB: predicated region body
PF: predicated region fallthrough
CT: control target
= control target key end

     0   :  { %vm159_vm1 = vcmask 523264   ;;  %vm183_vm2 = vcmask 80896   ;;  %s419_s1 = inlined_call_operand.vmem [shape: f32[256,128], index: 1, kind: input, shape index: {}]   ;;  %s420_s3 = inlined_call_operand.vmem [shape: f32[128,64], index: 3, kind: input, shape index: {}]   ;;  %s421_s2 = inlined_call_operand.vmem [shape: f32[1,128], index: 2, kind: input, shape index: {}]   ;;  %s422_s0 = inlined_call_operand.vmem [shape: f32[8,256], index: 0, kind: input, shape index: {}]   ;;  %s423_s4 = inlined_call_operand.vmem [shape: f32[1,64], index: 4, kind: input, shape index: {}]   ;;  %s424_s5 = inlined_call_operand.vmem [shape: f32[64,10], index: 5, kind: input, shape index: {}]   ;;  %s425_s6 = inlined_call_operand.vmem [shape: f32[1,10], index: 6, kind: input, shape index: {}]   ;;  %s426_s7 = inlined_call_operand.vmem [shape: f32[8,10], index: 7, kind: output, shape index: {}]  }
   0x1   :  { %v43_v0 = vld [vmem:[%s419_s1 + $0x78] sm:$0xff]  ;;  %v42_v1 = vld [vmem:[%s419_s1 + $0x70] sm:$0xff]  ;;  %v41_v4 = vld [vmem:[%s419_s1 + $0x68] sm:$0xff] }
   0x2   :  { %v59_v2 = vld [vmem:[%s419_s1 + $0xf8] sm:$0xff]  ;;  %64 = vmatpush.msra.mxu0 %v43_v0  ;;  %v58_v3 = vld [vmem:[%s419_s1 + $0xf0] sm:$0xff]  ;;  %v57_v5 = vld [vmem:[%s419_s1 + $0xe8] sm:$0xff] }
   0x3   :  { %84 = vmatpush.msra.mxu1 %v59_v2  ;;  %v40_v6 = vld [vmem:[%s419_s1 + $0x60] sm:$0xff]  ;;  %v39_v8 = vld [vmem:[%s419_s1 + $0x58] sm:$0xff]  ;;  %v38_v10 = vld [vmem:[%s419_s1 + $0x50] sm:$0xff] }
   0x4   :  { %65 = vmatpush.msra.mxu0 %v42_v1  ;;  %v56_v7 = vld [vmem:[%s419_s1 + $0xe0] sm:$0xff]  ;;  %v55_v9 = vld [vmem:[%s419_s1 + $0xd8] sm:$0xff]  ;;  %v54_v11 = vld [vmem:[%s419_s1 + $0xd0] sm:$0xff] }
   0x5   :  { %85 = vmatpush.msra.mxu1 %v58_v3  ;;  %v37_v12 = vld [vmem:[%s419_s1 + $0x48] sm:$0xff]  ;;  %v122_v14 = vld [vmem:[%s420_s3 + $0x78] sm:$0xff]  ;;  %v121_v15 = vld [vmem:[%s420_s3 + $0x70] sm:$0xff] }
   0x6   :  { %66 = vmatpush.msra.mxu0 %v41_v4  ;;  %v53_v13 = vld [vmem:[%s419_s1 + $0xc8] sm:$0xff]  ;;  %v36_v16 = vld [vmem:[%s419_s1 + $0x40] sm:$0xff]  ;;  %127 = vmatpush.msra.mxu2 %v122_v14  ;;  %v35_v19 = vld [vmem:[%s419_s1 + $0x38] sm:$0xff] }
   0x7   :  { %86 = vmatpush.msra.mxu1 %v57_v5  ;;  %v52_v17 = vld [vmem:[%s419_s1 + $0xc0] sm:$0xff]  ;;  %v120_v18 = vld [vmem:[%s420_s3 + $0x68] sm:$0xff]  ;;  %v51_v20 = vld [vmem:[%s419_s1 + $0xb8] sm:$0xff] }
   0x8   :  { %67 = vmatpush.msra.mxu0 %v40_v6  ;;  %128 = vmatpush.msra.mxu2 %v121_v15  ;;  %v119_v21 = vld [vmem:[%s420_s3 + $0x60] sm:$0xff]  ;;  %v34_v22 = vld [vmem:[%s419_s1 + $0x30] sm:$0xff]  ;;  %v118_v24 = vld [vmem:[%s420_s3 + $0x58] sm:$0xff] }
   0x9   :  { %87 = vmatpush.msra.mxu1 %v56_v7  ;;  %v50_v23 = vld [vmem:[%s419_s1 + $0xb0] sm:$0xff]  ;;  %v33_v25 = vld [vmem:[%s419_s1 + $0x28] sm:$0xff]  ;;  %v32_v28 = vld [vmem:[%s419_s1 + $0x20] sm:$0xff] }
   0xa   :  { %68 = vmatpush.msra.mxu0 %v39_v8  ;;  %129 = vmatpush.msra.mxu2 %v120_v18  ;;  %v49_v26 = vld [vmem:[%s419_s1 + $0xa8] sm:$0xff]  ;;  %v117_v27 = vld [vmem:[%s420_s3 + $0x50] sm:$0xff]  ;;  %v48_v29 = vld [vmem:[%s419_s1 + $0xa0] sm:$0xff] }
   0xb   :  { %88 = vmatpush.msra.mxu1 %v55_v9  ;;  %v116_v30 = vld [vmem:[%s420_s3 + $0x48] sm:$0xff]  ;;  %v31_v31 = vld [vmem:[%s419_s1 + $0x18] sm:$0xff]  ;;  %v115_v33 = vld [vmem:[%s420_s3 + $0x40] sm:$0xff] }
   0xc   :  { %69 = vmatpush.msra.mxu0 %v38_v10  ;;  %130 = vmatpush.msra.mxu2 %v119_v21  ;;  %v47_v32 = vld [vmem:[%s419_s1 + $0x98] sm:$0xff]  ;;  %v30_v34 = vld [vmem:[%s419_s1 + $0x10] sm:$0xff]  ;;  %v29_v37 = vld [vmem:[%s419_s1 + $0x8] sm:$0xff] }
   0xd   :  { %89 = vmatpush.msra.mxu1 %v54_v11  ;;  %v46_v35 = vld [vmem:[%s419_s1 + $0x90] sm:$0xff]  ;;  %v114_v36 = vld [vmem:[%s420_s3 + $0x38] sm:$0xff]  ;;  %v45_v38 = vld [vmem:[%s419_s1 + $0x88] sm:$0xff] }
   0xe   :  { %70 = vmatpush.msra.mxu0 %v37_v12  ;;  %131 = vmatpush.msra.mxu2 %v118_v24  ;;  %v113_v39 = vld [vmem:[%s420_s3 + $0x30] sm:$0xff]  ;;  %v28_v40 = vld [vmem:[%s419_s1] sm:$0xff]  ;;  %v27_v43 = vld [vmem:[%s422_s0 + $0x8] sm:$0xff] }
   0xf   :  { %90 = vmatpush.msra.mxu1 %v53_v13  ;;  %v44_v41 = vld [vmem:[%s419_s1 + $0x80] sm:$0xff]  ;;  %v112_v44 = vld [vmem:[%s420_s3 + $0x28] sm:$0xff]  ;;  %v110_v46 = vld [vmem:[%s420_s3 + $0x18] sm:$0xff] }
  0x10   :  { %71 = vmatpush.msra.mxu0 %v36_v16  ;;  %132 = vmatpush.msra.mxu2 %v117_v27  ;;  %v26_v42 = vld [vmem:[%s422_s0] sm:$0xff]  ;;  %v109_v47 = vld [vmem:[%s420_s3 + $0x10] sm:$0xff]  ;;  %v108_v48 = vld [vmem:[%s420_s3 + $0x8] sm:$0xff] }
  0x11   :  { %91 = vmatpush.msra.mxu1 %v52_v17  ;;  %v111_v45 = vld [vmem:[%s420_s3 + $0x20] sm:$0xff]  ;;  %v154_v50 = vld [vmem:[%s424_s5 + $0x38] sm:$0xff]  ;;  %v153_v51 = vld [vmem:[%s424_s5 + $0x30] sm:$0xff] }
  0x12   :  { %72 = vmatpush.msra.mxu0 %v35_v19  ;;  %133 = vmatpush.msra.mxu2 %v116_v30  ;;  %v107_v49 = vld [vmem:[%s420_s3] sm:$0xff]  ;;  %v152_v52 = vld [vmem:[%s424_s5 + $0x28] sm:$0xff]  ;;  %v150_v54 = vld [vmem:[%s424_s5 + $0x18] sm:$0xff] }
  0x13   :  { %92 = vmatpush.msra.mxu1 %v51_v20  ;;  %171 = vmatpush.msra.mxu3 %v154_v50  ;;  %v151_v53 = vld [vmem:[%s424_s5 + $0x20] sm:$0xff]  ;;  %v149_v55 = vld [vmem:[%s424_s5 + $0x10] sm:$0xff]  ;;  %v148_v63 = vld [vmem:[%s424_s5 + $0x8] sm:$0xff] }
  0x14   :  { %73 = vmatpush.msra.mxu0 %v34_v22  ;;  %134 = vmatpush.msra.mxu2 %v115_v33  ;;  %v190_v56 = vld [vmem:[%s421_s2] ss:$0 sm:$0xff] }
  0x15   :  { %93 = vmatpush.msra.mxu1 %v50_v23  ;;  %172 = vmatpush.msra.mxu3 %v153_v51  ;;  %v147_v0 = vld [vmem:[%s424_s5] sm:$0xff] }
  0x16   :  { %74 = vmatpush.msra.mxu0 %v33_v25  ;;  %135 = vmatpush.msra.mxu2 %v114_v36  ;;  %v191_v1 = vld [vmem:[%s423_s4] ss:$0 sm:$0xff] }
  0x17   :  { %94 = vmatpush.msra.mxu1 %v49_v26  ;;  %173 = vmatpush.msra.mxu3 %v152_v52  ;;  %v192_v4 = vld [vmem:[%s425_s6] ss:$0 sm:$0xff] }
  0x18   :  { %75 = vmatpush.msra.mxu0 %v32_v28  ;;  %136 = vmatpush.msra.mxu2 %v113_v39 }
  0x19   :  { %95 = vmatpush.msra.mxu1 %v48_v29  ;;  %174 = vmatpush.msra.mxu3 %v151_v53 }
  0x1a   :  { %76 = vmatpush.msra.mxu0 %v31_v31  ;;  %137 = vmatpush.msra.mxu2 %v112_v44 }
  0x1b   :  { %96 = vmatpush.msra.mxu1 %v47_v32  ;;  %175 = vmatpush.msra.mxu3 %v150_v54 }
  0x1c   :  { %77 = vmatpush.msra.mxu0 %v30_v34  ;;  %138 = vmatpush.msra.mxu2 %v111_v45 }
  0x1d   :  { %97 = vmatpush.msra.mxu1 %v46_v35  ;;  %176 = vmatpush.msra.mxu3 %v149_v55 }
  0x1e   :  { %78 = vmatpush.msra.mxu0 %v29_v37  ;;  %139 = vmatpush.msra.mxu2 %v110_v46 }
  0x1f   :  { %98 = vmatpush.msra.mxu1 %v45_v38  ;;  %177 = vmatpush.msra.mxu3 %v148_v63 }
  0x20   :  { %79 = vmatpush.msra.mxu0 %v28_v40  ;;  %140 = vmatpush.msra.mxu2 %v109_v47 }
  0x21   :  { %99 = vmatpush.msra.mxu1 %v44_v41  ;;  %80 = vmatmul.f32.vlgmr.msra.gmra.mxu0 %v26_v42 }
  0x22   :  { %100 = vmatmul.f32.vlgmr.msra.gmra.mxu1 %v27_v43  ;;  %141 = vmatpush.msra.mxu2 %v108_v48 }
  0x23   :  { %178 = vmatpush.msra.mxu3 %v147_v0 }
  0x24   :  { %142 = vmatpush.msra.mxu2 %v107_v49 }
  0x9e   :  { %v81_v57 = vpop.f32.mrf.mxu0 }
  0x9f   :  { %v101_v58 = vpop.f32.mrf.mxu1  ;;  %v82_v59 = vadd.f32 %v190_v56, %v81_v57 }
  0xa1   :  { %v102_v60 = vadd.f32 %v101_v58, %v82_v59 }
  0xa3   :  { %vm104_vm0 = vcmp.ge.f32.partialorder %v102_v60, 0.0  ;;  %v105_v61 = vmul.f32 0.01, %v102_v60 }
  0xa5   :  { %v106_v62 = vsel %vm104_vm0, %v102_v60, %v105_v61 }
  0xa6   :  { %143 = vmatmul.f32.vlgmr.msra.gmra.mxu2 %v106_v62 }
 0x129   :  { %v144_v2 = vpop.f32.mrf.mxu2 }
 0x12a   :  { %v145_v3 = vadd.f32 %v191_v1, %v144_v2 }
 0x12c   :  { %189 = vmatmul.msk.f32.vlgmr.msra.gmra.mxu3 %vm159_vm1, %v145_v3 }
 0x1af   :  { %v180_v5 = vpop.f32.mrf.mxu3 }
 0x1b0   :  { %v181_v6 = vadd.f32 %v192_v4, %v180_v5 }
 0x1b2   :  { %184 = vst.msk [vmem:[%s426_s7] sm:$0xff] %vm183_vm2, %v181_v6 }

</bundles_post_ra>
